<compile_context>
chip_gen: v6e
topology: v6e:2x2x1
jax: 0.10.0
libtpu: 0.0.40
codegen_flags: <defaults>
</compile_context>

<pallas_src>
import jax
import jax.numpy as jnp
from jax.experimental import pallas as pl
from jax.experimental.pallas import tpu as pltpu

# Small, deterministic hyperparameters consistent with MyCNN.__init__
VOCAB = 32            # input_size
H1    = 16            # hidden_size1 (embedding dim)
H2    = 32            # hidden_size2 (conv out channels)
OUT   = 4             # output_size
SEQ   = 8             # token sequence length
KW    = 5             # conv window in embedding vectors (kernel_size = 5*H1)
PAD   = (KW - 1) // 2 # 2 zero embedding rows each side (== Conv1d pad 2*H1)


def mycnn_kernel(ids_ref, emb_ref, wconv_ref, bconv_ref, wout_ref, bout_ref,
                 o_ref, xpad_ref):
    """Fused embed-gather + pad + conv-as-matmul + tanh + max-over-time + linear."""
    # --- 1) embedding gather + zero padding into VMEM scratch (SEQ+2*PAD, H1)
    xpad_ref[...] = jnp.zeros_like(xpad_ref)
    for i in range(SEQ):                              # SEQ static & tiny: unrolled
        tid = ids_ref[i]                              # int32 scalar from SMEM
        xpad_ref[pl.ds(PAD + i, 1), :] = emb_ref[pl.ds(tid, 1), :]

    # --- 2) Conv1d(1->H2, kernel=5*H1, stride=H1, pad=2*H1) as KW small dots
    #        s[t] = sum_k xpad[t+k] @ Wk,  Wk = wconv_t[k*H1:(k+1)*H1, :]
    s = jnp.zeros((SEQ, H2), jnp.float32)
    for k in range(KW):
        s = s + jnp.dot(xpad_ref[pl.ds(k, SEQ), :],
                        wconv_ref[pl.ds(k * H1, H1), :],
                        preferred_element_type=jnp.float32)

    # --- 3) tanh, max over sequence positions, output Linear
    h = jnp.tanh(s + bconv_ref[...])                  # (SEQ, H2)
    m = jnp.max(h, axis=0, keepdims=True)             # (1, H2)
    o_ref[...] = jnp.dot(m, wout_ref[...],
                         preferred_element_type=jnp.float32) + bout_ref[...]


def prepare_params(emb, w_conv, b_conv, w_out, b_out):
    """One-time parameter prep: torch layouts -> kernel-friendly layouts."""
    wconv_t = w_conv.reshape(H2, KW * H1).T           # (KW*H1, H2)
    wout_t  = w_out.T                                 # (H2, OUT)
    return (emb.astype(jnp.float32),
            wconv_t.astype(jnp.float32),
            b_conv.reshape(1, H2).astype(jnp.float32),
            wout_t.astype(jnp.float32),
            b_out.reshape(1, OUT).astype(jnp.float32))


def mycnn_forward(token_ids, params):
    emb, wconv_t, bconv2, wout_t, bout2 = params
    ids = token_ids.astype(jnp.int32)

    bytes_accessed = 4 * (SEQ + VOCAB * H1 + KW * H1 * H2 + H2 + H2 * OUT + OUT + OUT)
    out = pl.pallas_call(
        mycnn_kernel,
        out_shape=jax.ShapeDtypeStruct((1, OUT), jnp.float32),
        grid_spec=pltpu.PrefetchScalarGridSpec(
            num_scalar_prefetch=1,                    # token ids -> SMEM
            grid=(1,),
            in_specs=[pl.BlockSpec(memory_space=pltpu.MemorySpace.VMEM)] * 5,
            out_specs=pl.BlockSpec(memory_space=pltpu.MemorySpace.VMEM),
            scratch_shapes=[pltpu.VMEM((SEQ + 2 * PAD, H1), jnp.float32)],
        ),
        compiler_params=pltpu.CompilerParams(
            dimension_semantics=("arbitrary",)),
        cost_estimate=pl.CostEstimate(
            flops=2 * SEQ * KW * H1 * H2 + 2 * H2 * OUT,
            transcendentals=SEQ * H2,
            bytes_accessed=bytes_accessed),
    )(ids, emb, wconv_t, bconv2, wout_t, bout2)

    return out[0]                                     # (OUT,) — matches torch output


def mycnn_reference(token_ids, emb, w_conv, b_conv, w_out, b_out):
    """Pure-JAX reference of the PyTorch forward (for correctness check)."""
    e = emb[token_ids]                                # (SEQ, H1)
    xpad = jnp.pad(e, ((PAD, PAD), (0, 0)))           # (SEQ+4, H1)
    X = jnp.concatenate([xpad[k:k + SEQ, :] for k in range(KW)], axis=1)
    h = jnp.tanh(X @ w_conv.reshape(H2, KW * H1).T + b_conv)
    m = jnp.max(h, axis=0)
    return m @ w_out.T + b_out


if __name__ == "__main__":
    key = jax.random.PRNGKey(0)
    k1, k2, k3, k4, k5, k6 = jax.random.split(key, 6)

    # Deterministic synthetic parameters (shapes as in MyCNN.__init__, torch conventions)
    emb    = jax.random.normal(k1, (VOCAB, H1), jnp.float32) * 0.10      # Embedding weight
    w_conv = jax.random.normal(k2, (H2, 1, KW * H1), jnp.float32) * 0.05 # Conv1d weight
    b_conv = jax.random.normal(k3, (H2,), jnp.float32) * 0.05            # Conv1d bias
    w_out  = jax.random.normal(k4, (OUT, H2), jnp.float32) * 0.10        # Linear weight
    b_out  = jax.random.normal(k5, (OUT,), jnp.float32) * 0.10           # Linear bias

    token_ids = jax.random.randint(k6, (SEQ,), 0, VOCAB, dtype=jnp.int32)

    params = prepare_params(emb, w_conv, b_conv, w_out, b_out)
    y = mycnn_forward(token_ids, params)
    jax.block_until_ready(y)

    y_ref = mycnn_reference(token_ids, emb, w_conv, b_conv, w_out, b_out)
    assert y.shape == (OUT,) and y.dtype == jnp.float32
    assert jnp.allclose(y, y_ref, atol=1e-2, rtol=1e-2), (y, y_ref)
    print("KERNEL_OK")
</pallas_src>

<mosaic_0001>
module attributes {stable_mosaic.version = 11 : i64} {
  func.func @mycnn_kernel(%arg0: i32, %arg1: memref<8xi32, #tpu.memory_space<smem>>, %arg2: memref<32x16xf32, #tpu.memory_space<vmem>>, %arg3: memref<80x32xf32, #tpu.memory_space<vmem>>, %arg4: memref<1x32xf32, #tpu.memory_space<vmem>>, %arg5: memref<32x4xf32, #tpu.memory_space<vmem>>, %arg6: memref<1x4xf32, #tpu.memory_space<vmem>>, %arg7: memref<1x4xf32, #tpu.memory_space<vmem>>, %arg8: memref<12x16xf32, #tpu.memory_space<vmem>>) attributes {dimension_semantics = [#tpu.dimension_semantics<arbitrary>], iteration_bounds = array<i64: 1>, scalar_prefetch = 1 : i64, scratch_operands = 1 : i64, tpu.core_type = #tpu.core_type<tc>, window_params = [{pipeline_mode = #tpu.pipeline_mode<synchronous>, transform_indices = @transform_0, window_bounds = array<i64: 32, 16>}, {pipeline_mode = #tpu.pipeline_mode<synchronous>, transform_indices = @transform_1, window_bounds = array<i64: 80, 32>}, {pipeline_mode = #tpu.pipeline_mode<synchronous>, transform_indices = @transform_2, window_bounds = array<i64: 1, 32>}, {pipeline_mode = #tpu.pipeline_mode<synchronous>, transform_indices = @transform_3, window_bounds = array<i64: 32, 4>}, {pipeline_mode = #tpu.pipeline_mode<synchronous>, transform_indices = @transform_4, window_bounds = array<i64: 1, 4>}, {pipeline_mode = #tpu.pipeline_mode<synchronous>, transform_indices = @transform_5, window_bounds = array<i64: 1, 4>}]} {
    %cst = arith.constant 0.000000e+00 : f32
    %0 = vector.broadcast %cst : f32 to vector<12x16xf32>
    %c0 = arith.constant 0 : index
    %c0_0 = arith.constant 0 : index
    %1 = vector.load %arg8[%c0, %c0_0] : memref<12x16xf32, #tpu.memory_space<vmem>>, vector<12x16xf32>
    tpu.vector_store %arg8[%c0, %c0_0], %0 {strides = array<i32>} : memref<12x16xf32, #tpu.memory_space<vmem>>, vector<12x16xf32>,
    %c0_1 = arith.constant 0 : index
    %2 = memref.load %arg1[%c0_1] : memref<8xi32, #tpu.memory_space<smem>>
    %3 = arith.index_cast %2 : i32 to index
    %c0_2 = arith.constant 0 : index
    %4 = vector.load %arg2[%3, %c0_2] : memref<32x16xf32, #tpu.memory_space<vmem>>, vector<1x16xf32>
    %c2 = arith.constant 2 : index
    %c0_3 = arith.constant 0 : index
    %5 = vector.load %arg8[%c2, %c0_3] : memref<12x16xf32, #tpu.memory_space<vmem>>, vector<1x16xf32>
    tpu.vector_store %arg8[%c2, %c0_3], %4 {strides = array<i32>} : memref<12x16xf32, #tpu.memory_space<vmem>>, vector<1x16xf32>,
    %c1 = arith.constant 1 : index
    %6 = memref.load %arg1[%c1] : memref<8xi32, #tpu.memory_space<smem>>
    %7 = arith.index_cast %6 : i32 to index
    %c0_4 = arith.constant 0 : index
    %8 = vector.load %arg2[%7, %c0_4] : memref<32x16xf32, #tpu.memory_space<vmem>>, vector<1x16xf32>
    %c3 = arith.constant 3 : index
    %c0_5 = arith.constant 0 : index
    %9 = vector.load %arg8[%c3, %c0_5] : memref<12x16xf32, #tpu.memory_space<vmem>>, vector<1x16xf32>
    tpu.vector_store %arg8[%c3, %c0_5], %8 {strides = array<i32>} : memref<12x16xf32, #tpu.memory_space<vmem>>, vector<1x16xf32>,
    %c2_6 = arith.constant 2 : index
    %10 = memref.load %arg1[%c2_6] : memref<8xi32, #tpu.memory_space<smem>>
    %11 = arith.index_cast %10 : i32 to index
    %c0_7 = arith.constant 0 : index
    %12 = vector.load %arg2[%11, %c0_7] : memref<32x16xf32, #tpu.memory_space<vmem>>, vector<1x16xf32>
    %c4 = arith.constant 4 : index
    %c0_8 = arith.constant 0 : index
    %13 = vector.load %arg8[%c4, %c0_8] : memref<12x16xf32, #tpu.memory_space<vmem>>, vector<1x16xf32>
    tpu.vector_store %arg8[%c4, %c0_8], %12 {strides = array<i32>} : memref<12x16xf32, #tpu.memory_space<vmem>>, vector<1x16xf32>,
    %c3_9 = arith.constant 3 : index
    %14 = memref.load %arg1[%c3_9] : memref<8xi32, #tpu.memory_space<smem>>
    %15 = arith.index_cast %14 : i32 to index
    %c0_10 = arith.constant 0 : index
    %16 = vector.load %arg2[%15, %c0_10] : memref<32x16xf32, #tpu.memory_space<vmem>>, vector<1x16xf32>
    %c5 = arith.constant 5 : index
    %c0_11 = arith.constant 0 : index
    %17 = vector.load %arg8[%c5, %c0_11] : memref<12x16xf32, #tpu.memory_space<vmem>>, vector<1x16xf32>
    tpu.vector_store %arg8[%c5, %c0_11], %16 {strides = array<i32>} : memref<12x16xf32, #tpu.memory_space<vmem>>, vector<1x16xf32>,
    %c4_12 = arith.constant 4 : index
    %18 = memref.load %arg1[%c4_12] : memref<8xi32, #tpu.memory_space<smem>>
    %19 = arith.index_cast %18 : i32 to index
    %c0_13 = arith.constant 0 : index
    %20 = vector.load %arg2[%19, %c0_13] : memref<32x16xf32, #tpu.memory_space<vmem>>, vector<1x16xf32>
    %c6 = arith.constant 6 : index
    %c0_14 = arith.constant 0 : index
    %21 = vector.load %arg8[%c6, %c0_14] : memref<12x16xf32, #tpu.memory_space<vmem>>, vector<1x16xf32>
    tpu.vector_store %arg8[%c6, %c0_14], %20 {strides = array<i32>} : memref<12x16xf32, #tpu.memory_space<vmem>>, vector<1x16xf32>,
    %c5_15 = arith.constant 5 : index
    %22 = memref.load %arg1[%c5_15] : memref<8xi32, #tpu.memory_space<smem>>
    %23 = arith.index_cast %22 : i32 to index
    %c0_16 = arith.constant 0 : index
    %24 = vector.load %arg2[%23, %c0_16] : memref<32x16xf32, #tpu.memory_space<vmem>>, vector<1x16xf32>
    %c7 = arith.constant 7 : index
    %c0_17 = arith.constant 0 : index
    %25 = vector.load %arg8[%c7, %c0_17] : memref<12x16xf32, #tpu.memory_space<vmem>>, vector<1x16xf32>
    tpu.vector_store %arg8[%c7, %c0_17], %24 {strides = array<i32>} : memref<12x16xf32, #tpu.memory_space<vmem>>, vector<1x16xf32>,
    %c6_18 = arith.constant 6 : index
    %26 = memref.load %arg1[%c6_18] : memref<8xi32, #tpu.memory_space<smem>>
    %27 = arith.index_cast %26 : i32 to index
    %c0_19 = arith.constant 0 : index
    %28 = vector.load %arg2[%27, %c0_19] : memref<32x16xf32, #tpu.memory_space<vmem>>, vector<1x16xf32>
    %c8 = arith.constant 8 : index
    %c0_20 = arith.constant 0 : index
    %29 = vector.load %arg8[%c8, %c0_20] : memref<12x16xf32, #tpu.memory_space<vmem>>, vector<1x16xf32>
    tpu.vector_store %arg8[%c8, %c0_20], %28 {strides = array<i32>} : memref<12x16xf32, #tpu.memory_space<vmem>>, vector<1x16xf32>,
    %c7_21 = arith.constant 7 : index
    %30 = memref.load %arg1[%c7_21] : memref<8xi32, #tpu.memory_space<smem>>
    %31 = arith.index_cast %30 : i32 to index
    %c0_22 = arith.constant 0 : index
    %32 = vector.load %arg2[%31, %c0_22] : memref<32x16xf32, #tpu.memory_space<vmem>>, vector<1x16xf32>
    %c9 = arith.constant 9 : index
    %c0_23 = arith.constant 0 : index
    %33 = vector.load %arg8[%c9, %c0_23] : memref<12x16xf32, #tpu.memory_space<vmem>>, vector<1x16xf32>
    tpu.vector_store %arg8[%c9, %c0_23], %32 {strides = array<i32>} : memref<12x16xf32, #tpu.memory_space<vmem>>, vector<1x16xf32>,
    %cst_24 = arith.constant 0.000000e+00 : f32
    %34 = vector.broadcast %cst_24 : f32 to vector<8x32xf32>
    %c0_25 = arith.constant 0 : index
    %c0_26 = arith.constant 0 : index
    %35 = vector.load %arg8[%c0_25, %c0_26] : memref<12x16xf32, #tpu.memory_space<vmem>>, vector<8x16xf32>
    %c0_27 = arith.constant 0 : index
    %c0_28 = arith.constant 0 : index
    %36 = vector.load %arg3[%c0_27, %c0_28] : memref<80x32xf32, #tpu.memory_space<vmem>>, vector<16x32xf32>
    %cst_29 = arith.constant dense<0.000000e+00> : vector<8x32xf32>
    %37 = tpu.matmul %35, %36, %cst_29 {dimension_numbers = #tpu.dot_dimension_numbers<[1], [0], [0], [1], [0, 0, 1, 1], [], []>} : vector<8x16xf32>, vector<16x32xf32>, vector<8x32xf32> -> vector<8x32xf32>
    %38 = arith.addf %34, %37 : vector<8x32xf32>
    %c1_30 = arith.constant 1 : index
    %c0_31 = arith.constant 0 : index
    %39 = vector.load %arg8[%c1_30, %c0_31] : memref<12x16xf32, #tpu.memory_space<vmem>>, vector<8x16xf32>
    %c16 = arith.constant 16 : index
    %c0_32 = arith.constant 0 : index
    %40 = vector.load %arg3[%c16, %c0_32] : memref<80x32xf32, #tpu.memory_space<vmem>>, vector<16x32xf32>
    %cst_33 = arith.constant dense<0.000000e+00> : vector<8x32xf32>
    %41 = tpu.matmul %39, %40, %cst_33 {dimension_numbers = #tpu.dot_dimension_numbers<[1], [0], [0], [1], [0, 0, 1, 1], [], []>} : vector<8x16xf32>, vector<16x32xf32>, vector<8x32xf32> -> vector<8x32xf32>
    %42 = arith.addf %38, %41 : vector<8x32xf32>
    %c2_34 = arith.constant 2 : index
    %c0_35 = arith.constant 0 : index
    %43 = vector.load %arg8[%c2_34, %c0_35] : memref<12x16xf32, #tpu.memory_space<vmem>>, vector<8x16xf32>
    %c32 = arith.constant 32 : index
    %c0_36 = arith.constant 0 : index
    %44 = vector.load %arg3[%c32, %c0_36] : memref<80x32xf32, #tpu.memory_space<vmem>>, vector<16x32xf32>
    %cst_37 = arith.constant dense<0.000000e+00> : vector<8x32xf32>
    %45 = tpu.matmul %43, %44, %cst_37 {dimension_numbers = #tpu.dot_dimension_numbers<[1], [0], [0], [1], [0, 0, 1, 1], [], []>} : vector<8x16xf32>, vector<16x32xf32>, vector<8x32xf32> -> vector<8x32xf32>
    %46 = arith.addf %42, %45 : vector<8x32xf32>
    %c3_38 = arith.constant 3 : index
    %c0_39 = arith.constant 0 : index
    %47 = vector.load %arg8[%c3_38, %c0_39] : memref<12x16xf32, #tpu.memory_space<vmem>>, vector<8x16xf32>
    %c48 = arith.constant 48 : index
    %c0_40 = arith.constant 0 : index
    %48 = vector.load %arg3[%c48, %c0_40] : memref<80x32xf32, #tpu.memory_space<vmem>>, vector<16x32xf32>
    %cst_41 = arith.constant dense<0.000000e+00> : vector<8x32xf32>
    %49 = tpu.matmul %47, %48, %cst_41 {dimension_numbers = #tpu.dot_dimension_numbers<[1], [0], [0], [1], [0, 0, 1, 1], [], []>} : vector<8x16xf32>, vector<16x32xf32>, vector<8x32xf32> -> vector<8x32xf32>
    %50 = arith.addf %46, %49 : vector<8x32xf32>
    %c4_42 = arith.constant 4 : index
    %c0_43 = arith.constant 0 : index
    %51 = vector.load %arg8[%c4_42, %c0_43] : memref<12x16xf32, #tpu.memory_space<vmem>>, vector<8x16xf32>
    %c64 = arith.constant 64 : index
    %c0_44 = arith.constant 0 : index
    %52 = vector.load %arg3[%c64, %c0_44] : memref<80x32xf32, #tpu.memory_space<vmem>>, vector<16x32xf32>
    %cst_45 = arith.constant dense<0.000000e+00> : vector<8x32xf32>
    %53 = tpu.matmul %51, %52, %cst_45 {dimension_numbers = #tpu.dot_dimension_numbers<[1], [0], [0], [1], [0, 0, 1, 1], [], []>} : vector<8x16xf32>, vector<16x32xf32>, vector<8x32xf32> -> vector<8x32xf32>
    %54 = arith.addf %50, %53 : vector<8x32xf32>
    %c0_46 = arith.constant 0 : index
    %c0_47 = arith.constant 0 : index
    %55 = vector.load %arg4[%c0_46, %c0_47] : memref<1x32xf32, #tpu.memory_space<vmem>>, vector<1x32xf32>
    %56 = vector.broadcast %55 : vector<1x32xf32> to vector<8x32xf32>
    %57 = arith.addf %54, %56 : vector<8x32xf32>
    %58 = math.tanh %57 : vector<8x32xf32>
    %cst_48 = arith.constant dense<0xFF800000> : vector<32xf32>
    %59 = vector.multi_reduction <maximumf>, %58, %cst_48 [0] : vector<8x32xf32> to vector<32xf32>
    %60 = vector.shape_cast %59 : vector<32xf32> to vector<1x32xf32>
    %c0_49 = arith.constant 0 : index
    %c0_50 = arith.constant 0 : index
    %61 = vector.load %arg5[%c0_49, %c0_50] : memref<32x4xf32, #tpu.memory_space<vmem>>, vector<32x4xf32>
    %cst_51 = arith.constant dense<0.000000e+00> : vector<1x4xf32>
    %62 = tpu.matmul %60, %61, %cst_51 {dimension_numbers = #tpu.dot_dimension_numbers<[1], [0], [0], [1], [0, 0, 1, 1], [], []>} : vector<1x32xf32>, vector<32x4xf32>, vector<1x4xf32> -> vector<1x4xf32>
    %c0_52 = arith.constant 0 : index
    %c0_53 = arith.constant 0 : index
    %63 = vector.load %arg6[%c0_52, %c0_53] : memref<1x4xf32, #tpu.memory_space<vmem>>, vector<1x4xf32>
    %64 = arith.addf %62, %63 : vector<1x4xf32>
    %c0_54 = arith.constant 0 : index
    %c0_55 = arith.constant 0 : index
    %65 = vector.load %arg7[%c0_54, %c0_55] : memref<1x4xf32, #tpu.memory_space<vmem>>, vector<1x4xf32>
    tpu.vector_store %arg7[%c0_54, %c0_55], %64 {strides = array<i32>} : memref<1x4xf32, #tpu.memory_space<vmem>>, vector<1x4xf32>,
    return
  }
  func.func @transform_0(%arg0: i32, %arg1: memref<8xi32, #tpu.memory_space<smem>>) -> (i32, i32) {
    %c0_i32 = arith.constant 0 : i32
    %c0_i32_0 = arith.constant 0 : i32
    %c0_i32_1 = arith.constant 0 : i32
    return %c0_i32, %c0_i32_0 : i32, i32
  }
  func.func @transform_1(%arg0: i32, %arg1: memref<8xi32, #tpu.memory_space<smem>>) -> (i32, i32) {
    %c0_i32 = arith.constant 0 : i32
    %c0_i32_0 = arith.constant 0 : i32
    %c0_i32_1 = arith.constant 0 : i32
    return %c0_i32, %c0_i32_0 : i32, i32
  }
  func.func @transform_2(%arg0: i32, %arg1: memref<8xi32, #tpu.memory_space<smem>>) -> (i32, i32) {
    %c0_i32 = arith.constant 0 : i32
    %c0_i32_0 = arith.constant 0 : i32
    %c0_i32_1 = arith.constant 0 : i32
    return %c0_i32, %c0_i32_0 : i32, i32
  }
  func.func @transform_3(%arg0: i32, %arg1: memref<8xi32, #tpu.memory_space<smem>>) -> (i32, i32) {
    %c0_i32 = arith.constant 0 : i32
    %c0_i32_0 = arith.constant 0 : i32
    %c0_i32_1 = arith.constant 0 : i32
    return %c0_i32, %c0_i32_0 : i32, i32
  }
  func.func @transform_4(%arg0: i32, %arg1: memref<8xi32, #tpu.memory_space<smem>>) -> (i32, i32) {
    %c0_i32 = arith.constant 0 : i32
    %c0_i32_0 = arith.constant 0 : i32
    %c0_i32_1 = arith.constant 0 : i32
    return %c0_i32, %c0_i32_0 : i32, i32
  }
  func.func @transform_5(%arg0: i32, %arg1: memref<8xi32, #tpu.memory_space<smem>>) -> (i32, i32) {
    %c0_i32 = arith.constant 0 : i32
    %c0_i32_0 = arith.constant 0 : i32
    %c0_i32_1 = arith.constant 0 : i32
    return %c0_i32, %c0_i32_0 : i32, i32
  }
}

</mosaic_0001>

<bundles_post_ra>
// kernel: tpu_custom_call.1
= control target key start
LH: loop header
LB: loop body
LE: loop exit
PB: predicated region body
PF: predicated region fallthrough
CT: control target
= control target key end

     0   :  { %s848_s0 = inlined_call_operand.vmem [shape: s32[8], index: 0, kind: input, shape index: {}]   ;;  %s849_s1 = inlined_call_operand.vmem [shape: f32[32,16], index: 1, kind: input, shape index: {}]   ;;  %s850_s2 = inlined_call_operand.vmem [shape: f32[80,32], index: 2, kind: input, shape index: {}]   ;;  %s851_s3 = inlined_call_operand.vmem [shape: f32[1,32], index: 3, kind: input, shape index: {}]   ;;  %s852_s4 = inlined_call_operand.vmem [shape: f32[32,4], index: 4, kind: input, shape index: {}]   ;;  %s853_s5 = inlined_call_operand.vmem [shape: f32[1,4], index: 5, kind: input, shape index: {}]   ;;  %s854_s6 = inlined_call_operand.hbm [shape: f32[1,4], index: 6, kind: output, shape index: {}]  }
   0x1   :  { %s11_s23 = sshll.u32 %s848_s0, 4  ;;  %s12_s23 = int_to_ptr.vmem [resolvable:$true] %s11_s23 }
   0x2   :  { %s653_s24 = scalar_lea.vmem %s12_s23, 16  ;;  %p658_p1 = scmp.lt.s32.totalorder %s12_s23, %s12_s23 }
   0x3   :  { %p654_p0 = scmp.ne.s32.totalorder %s12_s23, %s653_s24  ;;  %p659_p2 = scmp.lt.s32.totalorder %s653_s24, %s653_s24 }
   0x5   :  { %p660_p3 = por %p659_p2, %p658_p1 }
   0x7   :  { %p661_p4 = pnand %p660_p3, %p654_p0 }
   0x9   :  { %664 = shalt.err (!%p661_p4)  }
   0xa   :  { %s689_s25 = smov [#allocation4]  }
   0xb   :  { %14 = dma.vmem_to_smem %s12_s23, 16, %s689_s25, [#allocation3] }
   0xc   :  { %685 = dma.done.wait [#allocation3], 16 }
   0xd   :  { %686 = vsyncadd [#allocation3], 4294967280 }
   0xe   :  { %16 = sfence }
   0xf   :  { %v70_v0 = vld [vmem:[%s850_s2 + $0x18] sm:$0xff]  ;;  %v67_v1 = vld [vmem:[%s850_s2 + $0x8] sm:$0xff]  ;;  %vm28_vm0 = vcmask 130048   ;;  %v690_v2 = vmov 0.0   ;;  %v69_v3 = vld [vmem:[%s850_s2 + $0x10] sm:$0xff]  ;;  %vm30_vm1 = vcmask 125952  }
  0x10   :  { %601 = vmatprep.subr.mxu0 %v690_v2  ;;  %608 = vmatprep.subr.mxu1 %v690_v2  ;;  %29 = vst.msk [vmem:[#allocation2] sm:$0xff] %vm28_vm0, %v690_v2  ;;  %s32_s7 = sld [smem:[#allocation4]]  ;;  %v66_v4 = vld [vmem:[%s850_s2] sm:$0xff] }
  0x11   :  { %602 = vmatpush3.msra.mxu0 %v70_v0  ;;  %609 = vmatpush3.msra.mxu1 %v67_v1  ;;  %31 = vst.msk [vmem:[#allocation2 + $0x8] sm:$0xf] %vm30_vm1, %v690_v2  ;;  %s567_s10 = sld [smem:[#allocation4 + $0x1]] }
  0x12   :  { %603 = vmatprep.subr.mxu0 %v690_v2  ;;  %610 = vmatprep.subr.mxu1 %v690_v2  ;;  %s568_s11 = sld [smem:[#allocation4 + $0x2]] }
  0x13   :  { %17 = vsyncpa [#allocation6], 0  ;;  %604 = vmatpush3.msra.mxu0 %v69_v3  ;;  %vm691_vm2 = vmmov 0   ;;  %s569_s12 = sld [smem:[#allocation4 + $0x3]]  ;;  %611 = vmatpush3.msra.mxu1 %v66_v4  ;;  %vm35_vm3 = vcmask 122880   ;;  %v296_v13 = vld [vmem:[%s850_s2 + $0x38] sm:$0xff] }
  0x14   :  { %605 = vmatprep.mubr.msk.f32.mxu0 %vm691_vm2, %v690_v2  ;;  %612 = vmatprep.mubr.msk.f32.mxu1 %vm691_vm2, %v690_v2  ;;  %s570_s13 = sld [smem:[#allocation4 + $0x4]]  ;;  %v219_v15 = vld [vmem:[%s850_s2 + $0x28] sm:$0xff]  ;;  %v218_v17 = vld [vmem:[%s850_s2 + $0x20] sm:$0xff]  ;;  %v295_v18 = vld [vmem:[%s850_s2 + $0x30] sm:$0xff]  ;;  %vm457_vm4 = vcmask 261120   ;;  %vm543_vm5 = vcmask 24576  }
  0x15   :  { %615 = vmatprep.subr.mxu0 %v690_v2  ;;  %s571_s14 = sld [smem:[#allocation4 + $0x5]]  ;;  %622 = vmatprep.subr.mxu1 %v690_v2  ;;  %v373_v21 = vld [vmem:[%s850_s2 + $0x48] sm:$0xff]  ;;  %v372_v22 = vld [vmem:[%s850_s2 + $0x40] sm:$0xff]  ;;  %v468_v24 = vld [vmem:[%s852_s4 + $0x18] sm:$0xff] }
  0x16   :  { %s33_s17 = scalar_lea.vmem %s849_s1, %s32_s7  ;;  %s572_s18 = sld [smem:[#allocation4 + $0x6]]  ;;  %v467_v25 = vld [vmem:[%s852_s4 + $0x10] sm:$0xff]  ;;  %v466_v26 = vld [vmem:[%s852_s4 + $0x8] sm:$0xff]  ;;  %v465_v27 = vld [vmem:[%s852_s4] sm:$0xff] }
  0x17   :  { %v34_v5 = vld [vmem:[%s33_s17] sm:$0x1]  ;;  %s38_s21 = scalar_lea.vmem %s849_s1, %s567_s10  ;;  %s573_s22 = sld [smem:[#allocation4 + $0x7]] }
  0x18   :  { %36 = vst.msk [vmem:[#allocation2 + $0x2] sm:$0x1] %vm35_vm3, %v34_v5  ;;  %v39_v6 = vld [vmem:[%s38_s21] sm:$0x1]  ;;  %s42_s25 = scalar_lea.vmem %s849_s1, %s568_s11 }
  0x19   :  { %40 = vst.msk [vmem:[#allocation2 + $0x3] sm:$0x1] %vm35_vm3, %v39_v6  ;;  %v43_v7 = vld [vmem:[%s42_s25] sm:$0x1]  ;;  %s46_s28 = scalar_lea.vmem %s849_s1, %s569_s12 }
  0x1a   :  { %44 = vst.msk [vmem:[#allocation2 + $0x4] sm:$0x1] %vm35_vm3, %v43_v7  ;;  %v47_v8 = vld [vmem:[%s46_s28] sm:$0x1]  ;;  %s50_s30 = scalar_lea.vmem %s849_s1, %s570_s13 }
  0x1b   :  { %48 = vst.msk [vmem:[#allocation2 + $0x5] sm:$0x1] %vm35_vm3, %v47_v8  ;;  %v51_v9 = vld [vmem:[%s50_s30] sm:$0x1]  ;;  %s54_s9 = scalar_lea.vmem %s849_s1, %s571_s14 }
  0x1c   :  { %52 = vst.msk [vmem:[#allocation2 + $0x6] sm:$0x1] %vm35_vm3, %v51_v9  ;;  %v55_v10 = vld [vmem:[%s54_s9] sm:$0x1]  ;;  %s58_s12 = scalar_lea.vmem %s849_s1, %s572_s18 }
  0x1d   :  { %56 = vst.msk [vmem:[#allocation2 + $0x7] sm:$0x1] %vm35_vm3, %v55_v10  ;;  %v59_v11 = vld [vmem:[%s58_s12] sm:$0x1]  ;;  %s62_s13 = scalar_lea.vmem %s849_s1, %s573_s22  ;;  %s692_s12 = smov [#allocation5]  }
  0x1e   :  { %60 = vst.msk [vmem:[#allocation2 + $0x8] sm:$0x1] %vm35_vm3, %v59_v11  ;;  %v63_v12 = vld [vmem:[%s62_s13] sm:$0x1] }
  0x1f   :  { %64 = vst.msk [vmem:[#allocation2 + $0x9] sm:$0x1] %vm35_vm3, %v63_v12  ;;  %v579_v40 = vld [vmem:[%s851_s3] ss:$0 sm:$0xff]  ;;  %s551_s3 = sshll.u32 %s692_s12, 4  ;;  %s552_s3 = int_to_ptr.vmem [resolvable:$true] %s551_s3 }
  0x20   :  { %v469_v52 = vld [vmem:[%s853_s5] sm:$0x1]  ;;  %s665_s15 = scalar_lea.vmem %s552_s3, 16  ;;  %s669_s16 = scalar_lea.vmem %s552_s3, 32 }
  0x21   :  { %p666_p5 = scmp.ne.s32.totalorder %s552_s3, %s665_s15  ;;  %p670_p6 = scmp.lt.s32.totalorder %s552_s3, %s552_s3 }
  0x22   :  { %p671_p7 = scmp.lt.s32.totalorder %s669_s16, %s665_s15 }
  0x24   :  { %v65_v14 = vld [vmem:[#allocation2] sm:$0xff]  ;;  %p672_p8 = por %p671_p7, %p670_p6 }
  0x25   :  { %v68_v16 = vld [vmem:[#allocation2 + $0x1] sm:$0xff]  ;;  %613 = vmatmul.mubr.msk.f32.vlgmr.msra.gmra.mxu1 %vm28_vm0, %v65_v14 }
  0x26   :  { %606 = vmatmul.mubr.msk.f32.vlgmr.msra.gmra.mxu0 %vm28_vm0, %v68_v16  ;;  %623 = vmatpush3.msra.mxu1 %v296_v13  ;;  %v217_v19 = vld [vmem:[#allocation2 + $0x2] sm:$0xff]  ;;  %p673_p9 = pnand %p672_p8, %p666_p5 }
  0x27   :  { %616 = vmatpush3.msra.mxu0 %v219_v15  ;;  %624 = vmatprep.subr.mxu1 %v690_v2  ;;  %v294_v20 = vld [vmem:[#allocation2 + $0x3] sm:$0xff] }
  0x28   :  { %617 = vmatprep.subr.mxu0 %v690_v2  ;;  %619 = vmatprep.mubr.msk.f32.mxu0 %vm691_vm2, %v690_v2  ;;  %v371_v23 = vld [vmem:[#allocation2 + $0x4] sm:$0xff] }
  0x29   :  { %618 = vmatpush3.msra.mxu0 %v218_v17  ;;  %625 = vmatpush3.msra.mxu1 %v295_v18 }
  0x2a   :  { %626 = vmatprep.mubr.msk.f32.mxu1 %vm691_vm2, %v690_v2  ;;  %629 = vmatprep.subr.mxu0 %v690_v2 }
  0x2b   :  { %620 = vmatmul.mubr.msk.f32.vlgmr.msra.gmra.mxu0 %vm28_vm0, %v217_v19  ;;  %627 = vmatmul.mubr.msk.f32.vlgmr.msra.gmra.mxu1 %vm28_vm0, %v294_v20 }
  0x2c   :  { %630 = vmatpush3.msra.mxu0 %v373_v21  ;;  %633 = vmatprep.mubr.msk.f32.mxu0 %vm691_vm2, %v690_v2 }
  0x2d   :  { %631 = vmatprep.subr.mxu0 %v690_v2  ;;  %636 = vmatprep.subr.mxu1 %v690_v2 }
  0x2e   :  { %632 = vmatpush3.msra.mxu0 %v372_v22  ;;  %644 = vmatprep.mubr.msk.f32.mxu1 %vm691_vm2, %v690_v2 }
  0x2f   :  { %634 = vmatmul.mubr.msk.f32.vlgmr.msra.gmra.mxu0 %vm28_vm0, %v371_v23  ;;  %637 = vmatpush3.msra.mxu1 %v468_v24 }
  0x30   :  { %638 = vmatprep.subr.mxu1 %v690_v2 }
  0x31   :  { %639 = vmatpush3.msra.mxu1 %v467_v25 }
  0x32   :  { %640 = vmatprep.subr.mxu1 %v690_v2 }
  0x33   :  { %641 = vmatpush3.msra.mxu1 %v466_v26 }
  0x34   :  { %642 = vmatprep.subr.mxu1 %v690_v2 }
  0x35   :  { %643 = vmatpush3.msra.mxu1 %v465_v27 }
  0xe5   :  { %v213_v28 = vpop.f32.mrf.mxu1 }
  0xe6   :  { %v140_v29 = vpop.f32.mrf.mxu0 }
  0xe7   :  { %v614_v30 = vpop.f32.mrf.mxu1  ;;  %v214_v32 = vadd.f32 %v213_v28, %v140_v29 }
  0xe8   :  { %v607_v31 = vpop.f32.mrf.mxu0 }
  0xeb   :  { %v289_v33 = vpop.f32.mrf.mxu0  ;;  %v366_v34 = vpop.f32.mrf.mxu1 }
  0xec   :  { %v293_v35 = vadd.f32 %v289_v33, %v214_v32 }
  0xed   :  { %v621_v36 = vpop.f32.mrf.mxu0  ;;  %v628_v37 = vpop.f32.mrf.mxu1 }
  0xee   :  { %v370_v38 = vadd.f32 %v366_v34, %v293_v35 }
  0xef   :  { %v443_v39 = vpop.f32.mrf.mxu0 }
  0xf0   :  { %v447_v41 = vadd.f32 %v443_v39, %v370_v38 }
  0xf1   :  { %v635_v42 = vpop.f32.mrf.mxu0 }
  0xf2   :  { %v455_v43 = vadd.f32 %v579_v40, %v447_v41 }
  0xf4   :  { %651 = vtanh.f32 %v455_v43 }
 0x101   :  { %v652_v44 = vpop.eup %651 }
 0x102   :  { %v458_v45 = vsel %vm457_vm4, %v652_v44, -inf }
 0x103   :  { %v459_v46 = vrot.slane %v458_v45, 4 }
 0x105   :  { %v460_v47 = vmax.f32 %v458_v45, %v459_v46 }
 0x107   :  { %v461_v48 = vrot.slane %v460_v47, 2 }
 0x109   :  { %v462_v49 = vmax.f32 %v460_v47, %v461_v48 }
 0x10b   :  { %v463_v50 = vrot.slane %v462_v49, 1 }
 0x10d   :  { %v464_v51 = vmax.f32 %v462_v49, %v463_v50 }
 0x10f   :  { %645 = vmatmul.mubr.msk.f32.vlgmr.msra.gmra.mxu1 %vm457_vm4, %v464_v51 }
 0x1cf   :  { %v539_v53 = vpop.f32.mrf.mxu1 }
 0x1d0   :  { %v540_v54 = vadd.f32 %v539_v53, %v469_v52 }
 0x1d1   :  { %v646_v55 = vpop.f32.mrf.mxu1 }
 0x1d2   :  { %544 = vst.msk [vmem:[#allocation5] sm:$0x1] %vm543_vm5, %v540_v54 }
 0x1d3   :  { %676 = shalt.err (!%p673_p9)
}
 0x1d4   :  { %554 = dma.vmem_to_hbm [thread:$0]  %s552_s3, 16, %s854_s6, [#allocation6]  }
 0x1d5   :  { %687 = dma.done.wait [#allocation6], 16  }
 0x1d6   :  { %688 = vsyncadd [#allocation6], 4294967280 }
 0x1d7   :  { %558 = vsyncpa [#allocation6], 1 }

</bundles_post_ra>
